<compile_context>
chip_gen: v7x
topology: tpu7x:2x2x1
jax: 0.10.0
libtpu: 0.0.40
codegen_flags: <defaults>
</compile_context>

<pallas_src>
import jax
import jax.numpy as jnp
from jax.experimental import pallas as pl
from jax.experimental.pallas import tpu as pltpu

# SELU constants (torch.nn.SELU defaults)
_SELU_ALPHA = 1.6732632423543772848170429916717
_SELU_SCALE = 1.0507009873554804934193349852946

# Rows of 128 lanes per grid step: 1024*128 = 131072 examples/step
# (~2 MiB f32 input + 0.5 MiB output; ~5 MiB double-buffered VMEM).
_ROWS_PER_STEP = 1024


def _mlp_kernel(p_ref, x_ref, o_ref):
    # x tile: (4, R, 128) f32 -- one fully dense (R,128) plane per input feature.
    x0 = x_ref[0]
    x1 = x_ref[1]
    x2 = x_ref[2]
    x3 = x_ref[3]

    def selu_core(h):
        # SELU without the outer scale (folded into layer-2 weights in the wrapper).
        # exp arg is clamped so the unselected branch never overflows.
        return jnp.where(h > 0.0, h,
                         _SELU_ALPHA * (jnp.exp(jnp.minimum(h, 0.0)) - 1.0))

    # Linear(4, 2) as scalar-broadcast VPU math; 13 params read from SMEM.
    h0 = selu_core(p_ref[0] * x0 + p_ref[1] * x1 + p_ref[2] * x2
                   + p_ref[3] * x3 + p_ref[8])
    h1 = selu_core(p_ref[4] * x0 + p_ref[5] * x1 + p_ref[6] * x2
                   + p_ref[7] * x3 + p_ref[9])

    # Linear(2, 1) with SELU scale folded in, then exact sigmoid (exp on EUP).
    z = p_ref[10] * h0 + p_ref[11] * h1 + p_ref[12]
    o_ref[...] = 1.0 / (1.0 + jnp.exp(-z))


def _pack_params(w1, b1, w2, b2):
    # One small SMEM-resident parameter vector:
    #   [0:8]   w1 (2,4) row-major      [8:10]  b1
    #   [10:12] _SELU_SCALE * w2        [12]    b2       [13:16] padding
    return jnp.concatenate([
        jnp.asarray(w1, jnp.float32).reshape(8),
        jnp.asarray(b1, jnp.float32).reshape(2),
        _SELU_SCALE * jnp.asarray(w2, jnp.float32).reshape(2),
        jnp.asarray(b2, jnp.float32).reshape(1),
        jnp.zeros((3,), jnp.float32),
    ])


def _forward_feature_major(xt, params):
    """Fast path. xt: (4, B) float32 (feature-major). Returns (B, 1) float32.

    Producers that can emit the (4, B) layout directly should call this and
    skip the transpose in `mlp_forward`.
    """
    _, B = xt.shape
    if B == 0:
        return jnp.zeros((0, 1), jnp.float32)

    # --- tiling: sublane/lane aligned rows of 128 examples -------------------
    rows0 = pl.cdiv(B, 128)                       # lane-aligned row count
    grid_n = max(1, pl.cdiv(rows0, _ROWS_PER_STEP))
    if rows0 >= 16:                               # enough work: keep both v7x TCs busy
        grid_n = max(grid_n, 2)
    if grid_n > 1 and grid_n % 2:
        grid_n += 1
    rows_per_step = pl.cdiv(pl.cdiv(rows0, grid_n), 8) * 8   # sublane multiple of 8
    rows = grid_n * rows_per_step                 # exact tiling, no partial blocks
    b_pad = rows * 128                            # waste bounded by alignment, not tile size

    if b_pad != B:                                # only for unaligned batch sizes
        xt = jnp.pad(xt, ((0, 0), (0, b_pad - B)))
    x3d = xt.reshape(4, rows, 128)                # free: contiguous split of last axis

    out = pl.pallas_call(
        _mlp_kernel,
        out_shape=jax.ShapeDtypeStruct((rows, 128), jnp.float32),
        grid_spec=pltpu.PrefetchScalarGridSpec(
            num_scalar_prefetch=0,
            grid=(grid_n,),
            in_specs=[
                pl.BlockSpec(memory_space=pltpu.MemorySpace.SMEM),          # params (16,)
                pl.BlockSpec((4, rows_per_step, 128), lambda i: (0, i, 0)),  # x planes
            ],
            out_specs=pl.BlockSpec((rows_per_step, 128), lambda i: (i, 0)),  # dense out
        ),
        compiler_params=pltpu.CompilerParams(
            dimension_semantics=("parallel",)),   # shards steps across v7x's 2 TCs
    )(params, x3d)

    y = out.reshape(b_pad)                        # free (contiguous)
    if b_pad != B:
        y = y[:B]                                 # small copy, only when padded
    return y.reshape(B, 1)


@jax.jit
def mlp_forward(x, w1, b1, w2, b2):
    """x: (B, 4) f32 (PyTorch layout). w1: (2,4), b1: (2,), w2: (1,2), b2: (1,).

    Returns (B, 1) f32, matching `net.forward`.
    NOTE: the transpose below is the only extra HBM copy; fuse it upstream by
    producing (4, B) and calling `_forward_feature_major` directly.
    """
    B, d_in = x.shape
    assert d_in == 4
    params = _pack_params(w1, b1, w2, b2)
    xt = jnp.asarray(x, jnp.float32).T            # (4, B)
    return _forward_feature_major(xt, params)


def _torch_style_linear_init(key, out_f, in_f):
    # Mimic nn.Linear default init: U(-1/sqrt(fan_in), 1/sqrt(fan_in))
    kw, kb = jax.random.split(key)
    bound = 1.0 / jnp.sqrt(jnp.float32(in_f))
    w = jax.random.uniform(kw, (out_f, in_f), jnp.float32, -bound, bound)
    b = jax.random.uniform(kb, (out_f,), jnp.float32, -bound, bound)
    return w, b


def reference_forward(x, w1, b1, w2, b2):
    h = x @ w1.T + b1
    h = _SELU_SCALE * jnp.where(h > 0.0, h, _SELU_ALPHA * (jnp.exp(h) - 1.0))
    z = h @ w2.T + b2
    return 1.0 / (1.0 + jnp.exp(-z))


if __name__ == "__main__":
    key = jax.random.PRNGKey(0)
    k1, k2, kx1, kx2 = jax.random.split(key, 4)

    w1, b1 = _torch_style_linear_init(k1, 2, 4)   # lin1: Linear(4, 2)
    w2, b2 = _torch_style_linear_init(k2, 1, 2)   # lin2: Linear(2, 1)

    # Small batch (module-implied shape) + a ragged batch to exercise padding.
    for B, kx in ((8, kx1), (300, kx2)):
        x = jax.random.normal(kx, (B, 4), jnp.float32)
        out = jax.block_until_ready(mlp_forward(x, w1, b1, w2, b2))
        ref = reference_forward(x, w1, b1, w2, b2)
        assert out.shape == (B, 1)
        err = float(jnp.max(jnp.abs(out - ref)))
        assert err < 1e-5, err

    print("KERNEL_OK")
</pallas_src>

<mosaic_0001>
module attributes {stable_mosaic.version = 11 : i64} {
  func.func @_mlp_kernel(%arg0: i32, %arg1: memref<16xf32, #tpu.memory_space<smem>>, %arg2: memref<4x8x128xf32, #tpu.memory_space<vmem>>, %arg3: memref<8x128xf32, #tpu.memory_space<vmem>>) attributes {dimension_semantics = [#tpu.dimension_semantics<parallel>], iteration_bounds = array<i64: 1>, scalar_prefetch = 0 : i64, scratch_operands = 0 : i64, tpu.core_type = #tpu.core_type<tc>, window_params = [{transform_indices = @transform_0, window_bounds = array<i64: 16>}, {transform_indices = @transform_1, window_bounds = array<i64: 4, 8, 128>}, {transform_indices = @transform_2, window_bounds = array<i64: 8, 128>}]} {
    %c0 = arith.constant 0 : index
    %c0_0 = arith.constant 0 : index
    %c0_1 = arith.constant 0 : index
    %0 = vector.load %arg2[%c0, %c0_0, %c0_1] : memref<4x8x128xf32, #tpu.memory_space<vmem>>, vector<1x8x128xf32>
    %1 = vector.shape_cast %0 : vector<1x8x128xf32> to vector<8x128xf32>
    %c1 = arith.constant 1 : index
    %c0_2 = arith.constant 0 : index
    %c0_3 = arith.constant 0 : index
    %2 = vector.load %arg2[%c1, %c0_2, %c0_3] : memref<4x8x128xf32, #tpu.memory_space<vmem>>, vector<1x8x128xf32>
    %3 = vector.shape_cast %2 : vector<1x8x128xf32> to vector<8x128xf32>
    %c2 = arith.constant 2 : index
    %c0_4 = arith.constant 0 : index
    %c0_5 = arith.constant 0 : index
    %4 = vector.load %arg2[%c2, %c0_4, %c0_5] : memref<4x8x128xf32, #tpu.memory_space<vmem>>, vector<1x8x128xf32>
    %5 = vector.shape_cast %4 : vector<1x8x128xf32> to vector<8x128xf32>
    %c3 = arith.constant 3 : index
    %c0_6 = arith.constant 0 : index
    %c0_7 = arith.constant 0 : index
    %6 = vector.load %arg2[%c3, %c0_6, %c0_7] : memref<4x8x128xf32, #tpu.memory_space<vmem>>, vector<1x8x128xf32>
    %7 = vector.shape_cast %6 : vector<1x8x128xf32> to vector<8x128xf32>
    %c0_8 = arith.constant 0 : index
    %8 = memref.load %arg1[%c0_8] : memref<16xf32, #tpu.memory_space<smem>>
    %9 = vector.broadcast %8 : f32 to vector<8x128xf32>
    %10 = arith.mulf %9, %1 : vector<8x128xf32>
    %c1_9 = arith.constant 1 : index
    %11 = memref.load %arg1[%c1_9] : memref<16xf32, #tpu.memory_space<smem>>
    %12 = vector.broadcast %11 : f32 to vector<8x128xf32>
    %13 = arith.mulf %12, %3 : vector<8x128xf32>
    %14 = arith.addf %10, %13 : vector<8x128xf32>
    %c2_10 = arith.constant 2 : index
    %15 = memref.load %arg1[%c2_10] : memref<16xf32, #tpu.memory_space<smem>>
    %16 = vector.broadcast %15 : f32 to vector<8x128xf32>
    %17 = arith.mulf %16, %5 : vector<8x128xf32>
    %18 = arith.addf %14, %17 : vector<8x128xf32>
    %c3_11 = arith.constant 3 : index
    %19 = memref.load %arg1[%c3_11] : memref<16xf32, #tpu.memory_space<smem>>
    %20 = vector.broadcast %19 : f32 to vector<8x128xf32>
    %21 = arith.mulf %20, %7 : vector<8x128xf32>
    %22 = arith.addf %18, %21 : vector<8x128xf32>
    %c8 = arith.constant 8 : index
    %23 = memref.load %arg1[%c8] : memref<16xf32, #tpu.memory_space<smem>>
    %24 = vector.broadcast %23 : f32 to vector<8x128xf32>
    %25 = arith.addf %22, %24 : vector<8x128xf32>
    %cst = arith.constant 0.000000e+00 : f32
    %26 = vector.broadcast %cst : f32 to vector<8x128xf32>
    %27 = arith.cmpf ogt, %25, %26 : vector<8x128xf32>
    %cst_12 = arith.constant 0.000000e+00 : f32
    %28 = vector.broadcast %cst_12 : f32 to vector<8x128xf32>
    %29 = arith.minimumf %25, %28 : vector<8x128xf32>
    %30 = math.exp %29 : vector<8x128xf32>
    %cst_13 = arith.constant 1.000000e+00 : f32
    %31 = vector.broadcast %cst_13 : f32 to vector<8x128xf32>
    %32 = arith.subf %30, %31 : vector<8x128xf32>
    %cst_14 = arith.constant 1.67326319 : f32
    %33 = vector.broadcast %cst_14 : f32 to vector<8x128xf32>
    %34 = arith.mulf %33, %32 : vector<8x128xf32>
    %35 = arith.select %27, %25, %34 : vector<8x128xi1>, vector<8x128xf32>
    %c4 = arith.constant 4 : index
    %36 = memref.load %arg1[%c4] : memref<16xf32, #tpu.memory_space<smem>>
    %37 = vector.broadcast %36 : f32 to vector<8x128xf32>
    %38 = arith.mulf %37, %1 : vector<8x128xf32>
    %c5 = arith.constant 5 : index
    %39 = memref.load %arg1[%c5] : memref<16xf32, #tpu.memory_space<smem>>
    %40 = vector.broadcast %39 : f32 to vector<8x128xf32>
    %41 = arith.mulf %40, %3 : vector<8x128xf32>
    %42 = arith.addf %38, %41 : vector<8x128xf32>
    %c6 = arith.constant 6 : index
    %43 = memref.load %arg1[%c6] : memref<16xf32, #tpu.memory_space<smem>>
    %44 = vector.broadcast %43 : f32 to vector<8x128xf32>
    %45 = arith.mulf %44, %5 : vector<8x128xf32>
    %46 = arith.addf %42, %45 : vector<8x128xf32>
    %c7 = arith.constant 7 : index
    %47 = memref.load %arg1[%c7] : memref<16xf32, #tpu.memory_space<smem>>
    %48 = vector.broadcast %47 : f32 to vector<8x128xf32>
    %49 = arith.mulf %48, %7 : vector<8x128xf32>
    %50 = arith.addf %46, %49 : vector<8x128xf32>
    %c9 = arith.constant 9 : index
    %51 = memref.load %arg1[%c9] : memref<16xf32, #tpu.memory_space<smem>>
    %52 = vector.broadcast %51 : f32 to vector<8x128xf32>
    %53 = arith.addf %50, %52 : vector<8x128xf32>
    %cst_15 = arith.constant 0.000000e+00 : f32
    %54 = vector.broadcast %cst_15 : f32 to vector<8x128xf32>
    %55 = arith.cmpf ogt, %53, %54 : vector<8x128xf32>
    %cst_16 = arith.constant 0.000000e+00 : f32
    %56 = vector.broadcast %cst_16 : f32 to vector<8x128xf32>
    %57 = arith.minimumf %53, %56 : vector<8x128xf32>
    %58 = math.exp %57 : vector<8x128xf32>
    %cst_17 = arith.constant 1.000000e+00 : f32
    %59 = vector.broadcast %cst_17 : f32 to vector<8x128xf32>
    %60 = arith.subf %58, %59 : vector<8x128xf32>
    %cst_18 = arith.constant 1.67326319 : f32
    %61 = vector.broadcast %cst_18 : f32 to vector<8x128xf32>
    %62 = arith.mulf %61, %60 : vector<8x128xf32>
    %63 = arith.select %55, %53, %62 : vector<8x128xi1>, vector<8x128xf32>
    %c10 = arith.constant 10 : index
    %64 = memref.load %arg1[%c10] : memref<16xf32, #tpu.memory_space<smem>>
    %65 = vector.broadcast %64 : f32 to vector<8x128xf32>
    %66 = arith.mulf %65, %35 : vector<8x128xf32>
    %c11 = arith.constant 11 : index
    %67 = memref.load %arg1[%c11] : memref<16xf32, #tpu.memory_space<smem>>
    %68 = vector.broadcast %67 : f32 to vector<8x128xf32>
    %69 = arith.mulf %68, %63 : vector<8x128xf32>
    %70 = arith.addf %66, %69 : vector<8x128xf32>
    %c12 = arith.constant 12 : index
    %71 = memref.load %arg1[%c12] : memref<16xf32, #tpu.memory_space<smem>>
    %72 = vector.broadcast %71 : f32 to vector<8x128xf32>
    %73 = arith.addf %70, %72 : vector<8x128xf32>
    %cst_19 = arith.constant 0.000000e+00 : f32
    %74 = vector.broadcast %cst_19 : f32 to vector<8x128xf32>
    %75 = arith.subf %74, %73 : vector<8x128xf32>
    %76 = math.exp %75 : vector<8x128xf32>
    %cst_20 = arith.constant 1.000000e+00 : f32
    %77 = vector.broadcast %cst_20 : f32 to vector<8x128xf32>
    %78 = arith.addf %77, %76 : vector<8x128xf32>
    %cst_21 = arith.constant 1.000000e+00 : f32
    %79 = vector.broadcast %cst_21 : f32 to vector<8x128xf32>
    %80 = arith.divf %79, %78 : vector<8x128xf32>
    %c0_22 = arith.constant 0 : index
    %c0_23 = arith.constant 0 : index
    %81 = vector.load %arg3[%c0_22, %c0_23] : memref<8x128xf32, #tpu.memory_space<vmem>>, vector<8x128xf32>
    tpu.vector_store %arg3[%c0_22, %c0_23], %80 {strides = array<i32>} : memref<8x128xf32, #tpu.memory_space<vmem>>, vector<8x128xf32>,
    return
  }
  func.func @transform_0(%arg0: i32) -> i32 {
    %c0_i32 = arith.constant 0 : i32
    %c0_i32_0 = arith.constant 0 : i32
    return %c0_i32 : i32
  }
  func.func @transform_1(%arg0: i32) -> (i32, i32, i32) {
    %c0_i32 = arith.constant 0 : i32
    %c0_i32_0 = arith.constant 0 : i32
    %c0_i32_1 = arith.constant 0 : i32
    return %c0_i32, %arg0, %c0_i32_0 : i32, i32, i32
  }
  func.func @transform_2(%arg0: i32) -> (i32, i32) {
    %c0_i32 = arith.constant 0 : i32
    %c0_i32_0 = arith.constant 0 : i32
    return %arg0, %c0_i32 : i32, i32
  }
}

</mosaic_0001>

<bundles_post_ra>
// kernel: mlp_forward.1
= control target key start
LH: loop header
LB: loop body
LE: loop exit
PB: predicated region body
PF: predicated region fallthrough
CT: control target
= control target key end

     0   :  { %7 = vsyncpa [#allocation3], 0  ;;  %s177_s0 = inlined_call_operand.vmem [shape: f32[16], index: 0, kind: input, shape index: {}]   ;;  %s178_s1 = inlined_call_operand.vmem [shape: f32[4,8,128], index: 1, kind: input, shape index: {}]   ;;  %s179_s2 = inlined_call_operand.vmem [shape: f32[8,128], index: 2, kind: output, shape index: {}]  }
   0x1   :  { %s14_s11 = sshll.u32 %s177_s0, 4  ;;  %s15_s11 = int_to_ptr.vmem [resolvable:$true] %s14_s11 }
   0x2   :  { %s129_s12 = scalar_lea.vmem %s15_s11, 16  ;;  %p134_p1 = scmp.lt.s32.totalorder %s15_s11, %s15_s11 }
   0x3   :  { %p130_p0 = scmp.ne.s32.totalorder %s15_s11, %s129_s12  ;;  %p135_p2 = scmp.lt.s32.totalorder %s129_s12, %s129_s12 }
   0x5   :  { %p136_p3 = por %p135_p2, %p134_p1 }
   0x7   :  { %p137_p4 = pnand %p136_p3, %p130_p0 }
   0x9   :  { %140 = shalt.err (!%p137_p4)
}
   0xa   :  { %s143_s13 = smov [#allocation2]  }
   0xb   :  { %17 = dma.vmem_to_smem %s15_s11, 16, %s143_s13, [#allocation3]  }
   0xc   :  { %141 = dma.done.wait [#allocation3], 16  }
   0xd   :  { %142 = vsyncadd [#allocation3], 4294967280 }
   0xe   :  { %23 = sfence }
   0xf   :  { %s31_s14 = sld [smem:[#allocation2]]  ;;  %s106_s15 = sld [smem:[#allocation2 + $0x1]]  ;;  %v24_v0 = vld [vmem:[%s178_s1] sm:$0xff]  ;;  %v103_v1 = vld [vmem:[%s178_s1 + $0x8] sm:$0xff]  ;;  %v104_v2 = vld [vmem:[%s178_s1 + $0x10] sm:$0xff] }
  0x10   :  { %s107_s16 = sld [smem:[#allocation2 + $0x2]]  ;;  %s108_s17 = sld [smem:[#allocation2 + $0x3]]  ;;  %v105_v3 = vld [vmem:[%s178_s1 + $0x18] sm:$0xff] }
  0x11   :  { %s111_s18 = sld [smem:[#allocation2 + $0x4]]  ;;  %s112_s19 = sld [smem:[#allocation2 + $0x5]] }
  0x12   :  { %s113_s21 = sld [smem:[#allocation2 + $0x6]]  ;;  %s114_s22 = sld [smem:[#allocation2 + $0x7]] }
  0x13   :  { %s109_s27 = sld [smem:[#allocation2 + $0x8]]  ;;  %s115_s30 = sld [smem:[#allocation2 + $0x9]] }
  0x14   :  { %s117_s1 = sld [smem:[#allocation2 + $0xa]]  ;;  %s118_s3 = sld [smem:[#allocation2 + $0xb]] }
  0x15   :  { %v32_v4 = vstv %s31_s14  ;;  %v35_v6 = vstv %s106_s15  ;;  %s119_s4 = sld [smem:[#allocation2 + $0xc]] }
  0x16   :  { %v33_v5 = vmul.f32 %v32_v4, %v24_v0  ;;  %v39_v7 = vstv %s107_s16  ;;  %v36_v8 = vmul.f32 %v103_v1, %v35_v6  ;;  %v43_v10 = vstv %s108_s17 }
  0x17   :  { %v40_v9 = vmul.f32 %v104_v2, %v39_v7  ;;  %v44_v11 = vmul.f32 %v105_v3, %v43_v10  ;;  %v57_v12 = vstv %s111_s18  ;;  %v60_v13 = vstv %s112_s19 }
  0x18   :  { %v37_v14 = vadd.f32 %v36_v8, %v33_v5  ;;  %v58_v15 = vmul.f32 %v57_v12, %v24_v0  ;;  %v61_v16 = vmul.f32 %v103_v1, %v60_v13  ;;  %v64_v17 = vstv %s113_s21 }
  0x19   :  { %v65_v18 = vmul.f32 %v104_v2, %v64_v17  ;;  %v68_v19 = vstv %s114_s22  ;;  %v47_v23 = vstv %s109_s27  ;;  %v72_v26 = vstv %s115_s30 }
  0x1a   :  { %v41_v20 = vadd.f32 %v40_v9, %v37_v14  ;;  %v62_v21 = vadd.f32 %v61_v16, %v58_v15  ;;  %v69_v22 = vmul.f32 %v105_v3, %v68_v19  ;;  %v82_v39 = vstv %s117_s1 }
  0x1b   :  { %v85_v42 = vstv %s118_s3  ;;  %v89_v46 = vstv %s119_s4 }
  0x1c   :  { %v45_v24 = vadd.f32 %v44_v11, %v41_v20  ;;  %v66_v25 = vadd.f32 %v65_v18, %v62_v21 }
  0x1e   :  { %v48_v27 = vadd.f32 %v47_v23, %v45_v24  ;;  %v70_v28 = vadd.f32 %v69_v22, %v66_v25 }
  0x20   :  { %v50_v29 = vmin.f32 %v48_v27, 0.0  ;;  %v73_v30 = vadd.f32 %v72_v26, %v70_v28  ;;  %vm49_vm0 = vcmp.gt.f32.partialorder %v48_v27, 0.0 }
  0x22   :  { %v51_v31 = vmul.f32 1.442695, %v50_v29  ;;  %v75_v32 = vmin.f32 %v73_v30, 0.0  ;;  %vm74_vm1 = vcmp.gt.f32.partialorder %v73_v30, 0.0 }
  0x24   :  { %121 = vpow2.f32 %v51_v31  ;;  %v76_v33 = vmul.f32 1.442695, %v75_v32 }
  0x26   :  { %123 = vpow2.f32 %v76_v33 }
  0x2e   :  { %v122_v34 = vpop.eup %121 }
  0x2f   :  { %v110_v35 = vadd.f32 -1.0, %v122_v34 }
  0x30   :  { %v124_v36 = vpop.eup %123 }
  0x31   :  { %v54_v37 = vmul.f32 1.6732632, %v110_v35  ;;  %v116_v38 = vadd.f32 -1.0, %v124_v36 }
  0x33   :  { %v55_v40 = vsel %vm49_vm0, %v48_v27, %v54_v37  ;;  %v79_v41 = vmul.f32 1.6732632, %v116_v38 }
  0x34   :  { %v83_v43 = vmul.f32 %v82_v39, %v55_v40 }
  0x35   :  { %v80_v44 = vsel %vm74_vm1, %v73_v30, %v79_v41 }
  0x36   :  { %v86_v45 = vmul.f32 %v85_v42, %v80_v44 }
  0x38   :  { %v87_v47 = vadd.f32 %v86_v45, %v83_v43 }
  0x3a   :  { %v90_v48 = vadd.f32 %v89_v46, %v87_v47 }
  0x3c   :  { %v91_v49 = vsub.f32 0.0, %v90_v48 }
  0x3e   :  { %v92_v50 = vmul.f32 1.442695, %v91_v49 }
  0x40   :  { %125 = vpow2.f32 %v92_v50 }
  0x4a   :  { %v126_v51 = vpop.eup %125 }
  0x4b   :  { %v94_v52 = vadd.f32 1.0, %v126_v51 }
  0x4d   :  { %127 = vrcp.f32 %v94_v52 }
  0x57   :  { %v128_v53 = vpop.eup %127 }
  0x58   :  { %97 = vst [vmem:[%s179_s2] sm:$0xff] %v128_v53 }
  0x59   :  { %102 = vsyncpa [#allocation3], 1 }

</bundles_post_ra>
